<compile_context>
chip_gen: v7x
topology: tpu7x:2x2x1
jax: 0.10.0
libtpu: 0.0.40
codegen_flags: <defaults>
</compile_context>

<pallas_src>
import jax
import jax.numpy as jnp
from jax.experimental import pallas as pl
from jax.experimental.pallas import tpu as pltpu

NEGATIVE_SLOPE = (0.3, 0.5, 0.7, 0.9)
NUM_LAYERS = 4
FEATURES = 8
SLAB = FEATURES + 1  # 9: 8x8 weight + bias packed into the 9th row/column


def _mlp_leaky_kernel(x_ref, p_ref, o_ref):
    # x_ref: (1, 8) f32; p_ref: (4, 9, 9) packed params; o_ref: (1, 8) f32.
    a = x_ref[...].astype(jnp.float32)           # (1, 8) row: features on lanes
    for i in range(NUM_LAYERS):                  # static unroll (4 layers)
        layer = p_ref[i]                         # (9, 9) f32
        w = layer[0:FEATURES, 0:FEATURES]        # (8, 8)
        if i % 2 == 0:
            # Row activation (1,8), weight stored (out, in):
            #   prod[o,k] = w[o,k] * a[0,k]   (sublane broadcast, VPU)
            #   y[o]      = sum_k prod[o,k]   (lane reduce, XLU)
            b = layer[0:FEATURES, FEATURES:SLAB]             # (8, 1) bias column
            y = jnp.sum(w * a, axis=1, keepdims=True) + b    # (8, 1)
        else:
            # Column activation (8,1), weight stored (in, out):
            #   prod[k,o] = w[k,o] * a[k,0]   (lane broadcast, VPU)
            #   y[o]      = sum_k prod[k,o]   (sublane reduce, XLU)
            b = layer[FEATURES:SLAB, 0:FEATURES]             # (1, 8) bias row
            y = jnp.sum(w * a, axis=0, keepdims=True) + b    # (1, 8)
        # Leaky ReLU: cmp + mul + select (3 VPU ops)
        a = jnp.where(y > 0, y, y * NEGATIVE_SLOPE[i])
    o_ref[...] = a.astype(o_ref.dtype)           # (1, 8) row


def pack_params(w_torch, biases):
    """Pack PyTorch-layout params into one (4, 9, 9) f32 slab.

    w_torch: (4, 8, 8) weights in PyTorch layout (out, in); biases: (4, 8).
      even i: slab[i, :8, :8] = W   (out, in), slab[i, :8, 8] = bias (column)
      odd  i: slab[i, :8, :8] = W.T (in, out), slab[i, 8, :8] = bias (row)
    """
    slab = jnp.zeros((NUM_LAYERS, SLAB, SLAB), jnp.float32)
    for i in range(NUM_LAYERS):
        if i % 2 == 0:
            slab = slab.at[i, :FEATURES, :FEATURES].set(w_torch[i])
            slab = slab.at[i, :FEATURES, FEATURES].set(biases[i])
        else:
            slab = slab.at[i, :FEATURES, :FEATURES].set(w_torch[i].T)
            slab = slab.at[i, FEATURES, :FEATURES].set(biases[i])
    return slab


def model_forward(x, params):
    """x: (1, 8) f32; params: (4, 9, 9) f32 packed slab (see pack_params)."""
    assert x.shape == (1, FEATURES), "kernel is specialized for the spec's (1, 8) input"
    return pl.pallas_call(
        _mlp_leaky_kernel,
        out_shape=jax.ShapeDtypeStruct((1, FEATURES), x.dtype),
        in_specs=[
            pl.BlockSpec(memory_space=pltpu.VMEM),
            pl.BlockSpec(memory_space=pltpu.VMEM),
        ],
        out_specs=pl.BlockSpec(memory_space=pltpu.VMEM),
    )(x, params)


def init_params(key):
    """Deterministic init mimicking nn.Linear default: U(-1/sqrt(in), 1/sqrt(in))."""
    bound = 1.0 / jnp.sqrt(jnp.float32(FEATURES))
    kw, kb = jax.random.split(key)
    # PyTorch weight layout: (out, in) per layer.
    w_torch = jax.random.uniform(
        kw, (NUM_LAYERS, FEATURES, FEATURES), jnp.float32, -bound, bound
    )
    biases = jax.random.uniform(
        kb, (NUM_LAYERS, FEATURES), jnp.float32, -bound, bound
    )
    return w_torch, biases


def reference_forward(x, w_torch, biases):
    """Pure-JAX reference (PyTorch semantics: y = x A^T + b, then leaky-relu)."""
    for i in range(NUM_LAYERS):
        v1 = x @ w_torch[i].T + biases[i]
        x = jnp.where(v1 > 0, v1, v1 * NEGATIVE_SLOPE[i])
    return x


if __name__ == "__main__":
    key = jax.random.PRNGKey(0)
    kx, kp = jax.random.split(key)
    x1 = jax.random.normal(kx, (1, FEATURES), jnp.float32)  # matches torch.randn(1, 8)
    w_torch, biases = init_params(kp)
    params = pack_params(w_torch, biases)

    out = model_forward(x1, params)
    out = jax.block_until_ready(out)

    ref = reference_forward(x1, w_torch, biases)
    assert out.shape == (1, FEATURES)
    assert jnp.allclose(out, ref, atol=1e-5, rtol=1e-5)
    print("KERNEL_OK")
</pallas_src>

<mosaic_0001>
module attributes {stable_mosaic.version = 11 : i64} {
  func.func @_mlp_leaky_kernel(%arg0: memref<1x8xf32, #tpu.memory_space<vmem>>, %arg1: memref<4x9x9xf32, #tpu.memory_space<vmem>>, %arg2: memref<1x8xf32, #tpu.memory_space<vmem>>) attributes {dimension_semantics = [], scalar_prefetch = 0 : i64, scratch_operands = 0 : i64, tpu.core_type = #tpu.core_type<tc>} {
    %c0 = arith.constant 0 : index
    %c0_0 = arith.constant 0 : index
    %0 = vector.load %arg0[%c0, %c0_0] : memref<1x8xf32, #tpu.memory_space<vmem>>, vector<1x8xf32>
    %c0_1 = arith.constant 0 : index
    %c0_2 = arith.constant 0 : index
    %c0_3 = arith.constant 0 : index
    %1 = vector.load %arg1[%c0_1, %c0_2, %c0_3] : memref<4x9x9xf32, #tpu.memory_space<vmem>>, vector<1x9x9xf32>
    %2 = vector.shape_cast %1 : vector<1x9x9xf32> to vector<9x9xf32>
    %3 = vector.extract_strided_slice %2 {offsets = [0, 0], sizes = [8, 8], strides = [1, 1]} : vector<9x9xf32> to vector<8x8xf32>
    %4 = vector.extract_strided_slice %2 {offsets = [0, 8], sizes = [8, 1], strides = [1, 1]} : vector<9x9xf32> to vector<8x1xf32>
    %5 = vector.broadcast %0 : vector<1x8xf32> to vector<8x8xf32>
    %6 = arith.mulf %3, %5 : vector<8x8xf32>
    %cst = arith.constant dense<0.000000e+00> : vector<8xf32>
    %7 = vector.multi_reduction <add>, %6, %cst [1] : vector<8x8xf32> to vector<8xf32>
    %8 = vector.shape_cast %7 : vector<8xf32> to vector<8x1xf32>
    %9 = arith.addf %8, %4 : vector<8x1xf32>
    %cst_4 = arith.constant 0.000000e+00 : f32
    %10 = vector.broadcast %cst_4 : f32 to vector<8x1xf32>
    %11 = arith.cmpf ogt, %9, %10 : vector<8x1xf32>
    %cst_5 = arith.constant 3.000000e-01 : f32
    %12 = vector.broadcast %cst_5 : f32 to vector<8x1xf32>
    %13 = arith.mulf %9, %12 : vector<8x1xf32>
    %14 = arith.select %11, %9, %13 : vector<8x1xi1>, vector<8x1xf32>
    %c1 = arith.constant 1 : index
    %c0_6 = arith.constant 0 : index
    %c0_7 = arith.constant 0 : index
    %15 = vector.load %arg1[%c1, %c0_6, %c0_7] : memref<4x9x9xf32, #tpu.memory_space<vmem>>, vector<1x9x9xf32>
    %16 = vector.shape_cast %15 : vector<1x9x9xf32> to vector<9x9xf32>
    %17 = vector.extract_strided_slice %16 {offsets = [0, 0], sizes = [8, 8], strides = [1, 1]} : vector<9x9xf32> to vector<8x8xf32>
    %18 = vector.extract_strided_slice %16 {offsets = [8, 0], sizes = [1, 8], strides = [1, 1]} : vector<9x9xf32> to vector<1x8xf32>
    %19 = vector.broadcast %14 : vector<8x1xf32> to vector<8x8xf32>
    %20 = arith.mulf %17, %19 : vector<8x8xf32>
    %cst_8 = arith.constant dense<0.000000e+00> : vector<8xf32>
    %21 = vector.multi_reduction <add>, %20, %cst_8 [0] : vector<8x8xf32> to vector<8xf32>
    %22 = vector.shape_cast %21 : vector<8xf32> to vector<1x8xf32>
    %23 = arith.addf %22, %18 : vector<1x8xf32>
    %cst_9 = arith.constant 0.000000e+00 : f32
    %24 = vector.broadcast %cst_9 : f32 to vector<1x8xf32>
    %25 = arith.cmpf ogt, %23, %24 : vector<1x8xf32>
    %cst_10 = arith.constant 5.000000e-01 : f32
    %26 = vector.broadcast %cst_10 : f32 to vector<1x8xf32>
    %27 = arith.mulf %23, %26 : vector<1x8xf32>
    %28 = arith.select %25, %23, %27 : vector<1x8xi1>, vector<1x8xf32>
    %c2 = arith.constant 2 : index
    %c0_11 = arith.constant 0 : index
    %c0_12 = arith.constant 0 : index
    %29 = vector.load %arg1[%c2, %c0_11, %c0_12] : memref<4x9x9xf32, #tpu.memory_space<vmem>>, vector<1x9x9xf32>
    %30 = vector.shape_cast %29 : vector<1x9x9xf32> to vector<9x9xf32>
    %31 = vector.extract_strided_slice %30 {offsets = [0, 0], sizes = [8, 8], strides = [1, 1]} : vector<9x9xf32> to vector<8x8xf32>
    %32 = vector.extract_strided_slice %30 {offsets = [0, 8], sizes = [8, 1], strides = [1, 1]} : vector<9x9xf32> to vector<8x1xf32>
    %33 = vector.broadcast %28 : vector<1x8xf32> to vector<8x8xf32>
    %34 = arith.mulf %31, %33 : vector<8x8xf32>
    %cst_13 = arith.constant dense<0.000000e+00> : vector<8xf32>
    %35 = vector.multi_reduction <add>, %34, %cst_13 [1] : vector<8x8xf32> to vector<8xf32>
    %36 = vector.shape_cast %35 : vector<8xf32> to vector<8x1xf32>
    %37 = arith.addf %36, %32 : vector<8x1xf32>
    %cst_14 = arith.constant 0.000000e+00 : f32
    %38 = vector.broadcast %cst_14 : f32 to vector<8x1xf32>
    %39 = arith.cmpf ogt, %37, %38 : vector<8x1xf32>
    %cst_15 = arith.constant 0.699999988 : f32
    %40 = vector.broadcast %cst_15 : f32 to vector<8x1xf32>
    %41 = arith.mulf %37, %40 : vector<8x1xf32>
    %42 = arith.select %39, %37, %41 : vector<8x1xi1>, vector<8x1xf32>
    %c3 = arith.constant 3 : index
    %c0_16 = arith.constant 0 : index
    %c0_17 = arith.constant 0 : index
    %43 = vector.load %arg1[%c3, %c0_16, %c0_17] : memref<4x9x9xf32, #tpu.memory_space<vmem>>, vector<1x9x9xf32>
    %44 = vector.shape_cast %43 : vector<1x9x9xf32> to vector<9x9xf32>
    %45 = vector.extract_strided_slice %44 {offsets = [0, 0], sizes = [8, 8], strides = [1, 1]} : vector<9x9xf32> to vector<8x8xf32>
    %46 = vector.extract_strided_slice %44 {offsets = [8, 0], sizes = [1, 8], strides = [1, 1]} : vector<9x9xf32> to vector<1x8xf32>
    %47 = vector.broadcast %42 : vector<8x1xf32> to vector<8x8xf32>
    %48 = arith.mulf %45, %47 : vector<8x8xf32>
    %cst_18 = arith.constant dense<0.000000e+00> : vector<8xf32>
    %49 = vector.multi_reduction <add>, %48, %cst_18 [0] : vector<8x8xf32> to vector<8xf32>
    %50 = vector.shape_cast %49 : vector<8xf32> to vector<1x8xf32>
    %51 = arith.addf %50, %46 : vector<1x8xf32>
    %cst_19 = arith.constant 0.000000e+00 : f32
    %52 = vector.broadcast %cst_19 : f32 to vector<1x8xf32>
    %53 = arith.cmpf ogt, %51, %52 : vector<1x8xf32>
    %cst_20 = arith.constant 0.899999976 : f32
    %54 = vector.broadcast %cst_20 : f32 to vector<1x8xf32>
    %55 = arith.mulf %51, %54 : vector<1x8xf32>
    %56 = arith.select %53, %51, %55 : vector<1x8xi1>, vector<1x8xf32>
    %c0_21 = arith.constant 0 : index
    %c0_22 = arith.constant 0 : index
    %57 = vector.load %arg2[%c0_21, %c0_22] : memref<1x8xf32, #tpu.memory_space<vmem>>, vector<1x8xf32>
    tpu.vector_store %arg2[%c0_21, %c0_22], %56 {strides = array<i32>} : memref<1x8xf32, #tpu.memory_space<vmem>>, vector<1x8xf32>,
    return
  }
}

</mosaic_0001>

<bundles_post_ra>
// kernel: tpu_custom_call.1
= control target key start
LH: loop header
LB: loop body
LE: loop exit
PB: predicated region body
PF: predicated region fallthrough
CT: control target
= control target key end

     0   :  { %vm21_vm0 = vcmask 64512   ;;  %s187_s0 = inlined_call_operand.vmem [shape: f32[1,8], index: 0, kind: input, shape index: {}]   ;;  %s188_s1 = inlined_call_operand.vmem [shape: f32[4,9,9], index: 1, kind: input, shape index: {}]   ;;  %s189_s2 = inlined_call_operand.hbm [shape: f32[1,8], index: 2, kind: output, shape index: {}]  }
   0x1   :  { %v99_v0 = vld [vmem:[%s187_s0] ss:$0 sm:$0xff] }
   0x2   :  { %v13_v1 = vld [vmem:[%s188_s1] sm:$0xff] }
   0x3   :  { %7 = vsyncpa [#allocation3], 0  ;;  %v20_v2 = vmul.f32 %v99_v0, %v13_v1  ;;  %v133_v4 = vmov 8   ;;  %v100_v9 = vld [vmem:[%s188_s1 + $0x10] sm:$0xff]  ;;  %v51_v16 = vlaneseq  ;;  %v101_v19 = vld [vmem:[%s188_s1 + $0x18] sm:$0x1] }
   0x4   :  { %107 = vset.pattern.permute.xlu0 %v133_v4  ;;  %108 = vset.pattern.permute.xlu1 %v133_v4  ;;  %v102_v26 = vld [vmem:[%s188_s1 + $0x20] sm:$0xff]  ;;  %v103_v34 = vld [vmem:[%s188_s1 + $0x30] sm:$0xff]  ;;  %v104_v43 = vld [vmem:[%s188_s1 + $0x38] sm:$0x1]  ;;  %s134_s22 = smov [#allocation2]   ;;  %vm83_vm5 = vcmask 57344  }
   0x5   :  { %v22_v3 = vsel %vm21_vm0, %v20_v2, 0.0  ;;  %v52_v20 = vshrl.u32 %v51_v16, 7  ;;  %s91_s23 = sshll.u32 %s134_s22, 4  ;;  %s92_s23 = int_to_ptr.vmem [resolvable:$true] %s91_s23 }
   0x6   :  { %23 = vadd.xlane.f32.xlu0 %v22_v3  ;;  %s109_s24 = scalar_lea.vmem %s92_s23, 16  ;;  %s113_s25 = scalar_lea.vmem %s92_s23, 32 }
   0x7   :  { %v53_v23 = vsub.s32 0, %v52_v20  ;;  %p110_p0 = scmp.ne.s32.totalorder %s92_s23, %s109_s24  ;;  %p114_p1 = scmp.lt.s32.totalorder %s92_s23, %s92_s23 }
   0x8   :  { %p115_p2 = scmp.lt.s32.totalorder %s113_s25, %s109_s24 }
   0xa   :  { %p116_p3 = por %p115_p2, %p114_p1 }
   0xc   :  { %p117_p4 = pnand %p116_p3, %p110_p0 }
  0x93   :  { %v24_v5 = vpop.xlane.xlu0 %23 }
  0x94   :  { %v25_v6 = vadd.f32 %v24_v5, %v13_v1 }
  0x96   :  { %v27_v7 = vmul.f32 0.3, %v25_v6  ;;  %vm26_vm1 = vcmp.gt.f32.partialorder %v25_v6, 0.0 }
  0x98   :  { %v28_v8 = vsel %vm26_vm1, %v25_v6, %v27_v7 }
  0x99   :  { %34 = vperm.xlu0 %107, %v28_v8  }
 0x118   :  { %v35_v10 = vpop.permute.xlu0 %34 }
 0x119   :  { %v37_v11 = vmul.f32 %v100_v9, %v35_v10 }
 0x11b   :  { %v38_v12 = vsel %vm21_vm0, %v37_v11, 0.0 }
 0x11c   :  { %v39_v13 = vrot.slane %v38_v12, 4 }
 0x11e   :  { %v40_v14 = vadd.f32 %v39_v13, %v38_v12 }
 0x120   :  { %v41_v15 = vrot.slane %v40_v14, 2 }
 0x122   :  { %v42_v17 = vadd.f32 %v41_v15, %v40_v14 }
 0x124   :  { %v43_v18 = vrot.slane %v42_v17, 1 }
 0x126   :  { %v44_v21 = vadd.f32 %v43_v18, %v42_v17 }
 0x128   :  { %v45_v22 = vadd.f32 %v101_v19, %v44_v21 }
 0x12a   :  { %vm46_vm2 = vcmp.gt.f32.partialorder %v45_v22, 0.0  ;;  %v47_v24 = vmul.f32 0.5, %v45_v22 }
 0x12c   :  { %v48_v25 = vsel %vm46_vm2, %v45_v22, %v47_v24 }
 0x12d   :  { %v54_v27 = vrot.slane %v48_v25, %v53_v23 }
 0x12f   :  { %v55_v28 = vmul.f32 %v102_v26, %v54_v27 }
 0x131   :  { %v56_v29 = vsel %vm21_vm0, %v55_v28, 0.0 }
 0x132   :  { %57 = vadd.xlane.f32.xlu1 %v56_v29 }
 0x1bf   :  { %v58_v30 = vpop.xlane.xlu1 %57 }
 0x1c0   :  { %v59_v31 = vadd.f32 %v102_v26, %v58_v30 }
 0x1c2   :  { %v61_v32 = vmul.f32 0.7, %v59_v31  ;;  %vm60_vm3 = vcmp.gt.f32.partialorder %v59_v31, 0.0 }
 0x1c4   :  { %v62_v33 = vsel %vm60_vm3, %v59_v31, %v61_v32 }
 0x1c5   :  { %68 = vperm.xlu1 %108, %v62_v33  }
 0x244   :  { %v69_v35 = vpop.permute.xlu1 %68 }
 0x245   :  { %v71_v36 = vmul.f32 %v103_v34, %v69_v35 }
 0x247   :  { %v72_v37 = vsel %vm21_vm0, %v71_v36, 0.0 }
 0x248   :  { %v73_v38 = vrot.slane %v72_v37, 4 }
 0x24a   :  { %v74_v39 = vadd.f32 %v73_v38, %v72_v37 }
 0x24c   :  { %v75_v40 = vrot.slane %v74_v39, 2 }
 0x24e   :  { %v76_v41 = vadd.f32 %v75_v40, %v74_v39 }
 0x250   :  { %v77_v42 = vrot.slane %v76_v41, 1 }
 0x252   :  { %v78_v44 = vadd.f32 %v77_v42, %v76_v41 }
 0x254   :  { %v79_v45 = vadd.f32 %v104_v43, %v78_v44 }
 0x256   :  { %vm80_vm4 = vcmp.gt.f32.partialorder %v79_v45, 0.0  ;;  %v81_v46 = vmul.f32 0.9, %v79_v45 }
 0x258   :  { %v82_v47 = vsel %vm80_vm4, %v79_v45, %v81_v46 }
 0x259   :  { %84 = vst.msk [vmem:[#allocation2] sm:$0x1] %vm83_vm5, %v82_v47 }
 0x25a   :  { %120 = shalt.err (!%p117_p4)
}
 0x25b   :  { %s121_s27 = scalar_lea.hbm %s189_s2, 16 }
 0x25c   :  { %p122_p5 = scmp.ne.s32.totalorder %s189_s2, %s121_s27  ;;  %p125_p6 = scmp.lt.u32.totalorder %s121_s27, %s189_s2 }
 0x25e   :  { %p127_p7 = pnand %p125_p6, %p122_p5 }
 0x260   :  { %130 = shalt.err (!%p127_p7)
}
 0x261   :  { %94 = dma.vmem_to_hbm [thread:$0]  %s92_s23, 16, %s189_s2, [#allocation3]  }
 0x262   :  { %131 = dma.done.wait [#allocation3], 16  }
 0x263   :  { %132 = vsyncadd [#allocation3], 4294967280 }
 0x264   :  { %98 = vsyncpa [#allocation3], 1 }

</bundles_post_ra>
